<compile_context>
chip_gen: v6e
topology: v6e:2x2x1
jax: 0.10.0
libtpu: 0.0.40
codegen_flags: <defaults>
</compile_context>

<pallas_src>
import math
from functools import partial

import jax
import jax.numpy as jnp
from jax.experimental import pallas as pl
from jax.experimental.pallas import tpu as pltpu

_NEG_FILL = -10000.0  # Megatron attention_mask_func fill value


# ----------------------------- kernels ------------------------------------- #

def _masked_softmax_kernel(x_ref, m_ref, o_ref, *, scale, approx):
    # x_ref: (1, HC, TQ, SK); m_ref: (1, TQ or 1, SK) int8 (nonzero = masked)
    x = x_ref[...].astype(jnp.float32)                      # softmax_in_fp32
    if scale is not None:
        x = x * jnp.float32(scale)
    mask = (m_ref[...] != 0)[:, None, :, :]                 # broadcast over heads (and q)
    x = jnp.where(mask, jnp.float32(_NEG_FILL), x)          # Megatron masked_fill
    m = jnp.max(x, axis=-1, keepdims=True)
    e = jnp.exp(x - m)
    s = jnp.sum(e, axis=-1, keepdims=True)
    inv = pl.reciprocal(s, approx=True) if approx else (jnp.float32(1.0) / s)
    o_ref[...] = (e * inv).astype(o_ref.dtype)              # cast back to input dtype


def _softmax_kernel(x_ref, o_ref, *, scale, approx):
    # mask=None path: plain scaled softmax, no mask operand / traffic at all.
    x = x_ref[...].astype(jnp.float32)
    if scale is not None:
        x = x * jnp.float32(scale)
    m = jnp.max(x, axis=-1, keepdims=True)
    e = jnp.exp(x - m)
    s = jnp.sum(e, axis=-1, keepdims=True)
    inv = pl.reciprocal(s, approx=True) if approx else (jnp.float32(1.0) / s)
    o_ref[...] = (e * inv).astype(o_ref.dtype)


# --------------------------- tiling helpers --------------------------------- #

def _divisors_desc(n):
    return [d for d in range(n, 0, -1) if n % d == 0]


def _default_budgets():
    """(tile_budget_bytes, vmem_limit_bytes) sized per TPU generation."""
    vmem_cap = None
    try:
        info = pltpu.get_tpu_info()
        vmem_cap = getattr(info, "vmem_capacity_bytes", None)
    except Exception:
        vmem_cap = None
    if vmem_cap is not None and vmem_cap > 100 * 1024 * 1024:
        # v5e / v6e: 128 MiB physical VMEM -> big tiles amortize per-step overhead.
        return 14 * 1024 * 1024, 64 * 1024 * 1024
    # v7x (64 MiB per TC) or unknown chip: stay well under the ceiling.
    return 10 * 1024 * 1024, 46 * 1024 * 1024


def _pick_tiles(H, SQ, SK, x_bytes, mask_bytes, mask_rows_full, budget_bytes):
    """Pick (head_block, q_block) so the working set fits the VMEM budget.

    q_block is sublane-packing aligned for the input dtype (16 for 16-bit, 8 for
    fp32) or the full SQ; head_block divides H. Larger q tiles are preferred over
    larger head chunks (better vreg packing / unmasked stores). The accounting
    includes the fp32 compute temporaries Mosaic materializes, not just the
    double-buffered I/O tiles.
    """
    sub = 16 if x_bytes == 2 else 8
    q_opts = [t for t in _divisors_desc(SQ) if t == SQ or t % sub == 0]
    h_opts = _divisors_desc(H)

    def vmem_bytes(hc, tq):
        x_tile = hc * tq * SK * x_bytes
        tq_m = tq if mask_rows_full else 1
        m_tile = tq_m * SK * mask_bytes
        io = 2 * (2 * x_tile + m_tile)        # x in + out double-buffered, mask tile
        temps = 3 * hc * tq * SK * 4          # fp32 intermediates (x_f32, e, probs)
        return io + temps

    for tq in q_opts:                         # prefer larger tq over larger hc
        for hc in h_opts:
            if vmem_bytes(hc, tq) <= budget_bytes:
                return hc, tq
    return 1, q_opts[-1]


# ------------------------------ wrapper ------------------------------------- #

def fused_scale_mask_softmax(x, mask, *, scale,
                             approx_reciprocal=True,
                             tile_budget_bytes=None,
                             vmem_limit_bytes=None):
    """x: [b, np, sq, sk] (bf16/fp16/fp32); mask: bool [b|1, 1, sq|1, sk] (True =
    masked) or None -> probs [b, np, sq, sk] in x.dtype."""
    B, H, SQ, SK = x.shape
    x_bytes = x.dtype.itemsize

    budget_default, limit_default = _default_budgets()
    tile_budget_bytes = tile_budget_bytes or budget_default
    vmem_limit_bytes = vmem_limit_bytes or limit_default

    has_mask = mask is not None
    if has_mask:
        Bm, Hm, SQm, SKm = mask.shape
        assert Hm == 1 and SKm == SK and Bm in (1, B) and SQm in (1, SQ), (
            f"unsupported mask shape {mask.shape} for scores {x.shape}")
        # 1 B/elem mask (no bf16 cast pass, half the mask HBM/VMEM of a 2 B mask).
        mask3 = mask.reshape(Bm, SQm, SK).astype(jnp.int8)
    else:
        Bm, SQm = 1, 1
        mask3 = None

    mask_rows_full = has_mask and SQm == SQ
    hc, tq = _pick_tiles(H, SQ, SK, x_bytes,
                         mask_bytes=(1 if has_mask else 0),
                         mask_rows_full=mask_rows_full,
                         budget_bytes=tile_budget_bytes)

    # v7x megacore: expose >= 2 parallel grid steps for non-trivial problems so the
    # grid can be split across both TensorCores.
    if (B * (SQ // tq) * (H // hc) < 2 and hc > 1
            and hc * tq * SK * x_bytes >= (1 << 19)):
        hc = next(d for d in _divisors_desc(H) if d < hc)

    # Head axis innermost: the mask block index is constant across heads, so the
    # mask tile is DMA'd once per (batch, q-tile).
    grid = (B, SQ // tq, H // hc)

    x_spec = pl.BlockSpec((1, hc, tq, SK), lambda b, q, h: (b, h, q, 0))
    out_spec = pl.BlockSpec((1, hc, tq, SK), lambda b, q, h: (b, h, q, 0))

    n = B * H * SQ * SK
    mask_traffic = (Bm * SQm * SK) if has_mask else 0
    cost = pl.CostEstimate(flops=6 * n, transcendentals=n,
                           bytes_accessed=2 * n * x_bytes + mask_traffic)

    cparams = pltpu.CompilerParams(
        dimension_semantics=("parallel", "parallel", "parallel"),
        vmem_limit_bytes=vmem_limit_bytes)

    if has_mask:
        tq_m = tq if SQm == SQ else 1            # broadcast-over-sq masks stay 1 row
        mask_per_batch = (Bm == B)
        mask_per_row = (SQm == SQ)
        mask_spec = pl.BlockSpec(
            (1, tq_m, SK),
            lambda b, q, h: (b if mask_per_batch else 0,
                             q if mask_per_row else 0, 0))
        kernel = partial(_masked_softmax_kernel, scale=scale, approx=approx_reciprocal)
        in_specs = [x_spec, mask_spec]
        operands = (x, mask3)
    else:
        kernel = partial(_softmax_kernel, scale=scale, approx=approx_reciprocal)
        in_specs = [x_spec]
        operands = (x,)

    return pl.pallas_call(
        kernel,
        out_shape=jax.ShapeDtypeStruct((B, H, SQ, SK), x.dtype),
        grid_spec=pltpu.PrefetchScalarGridSpec(
            num_scalar_prefetch=0,
            grid=grid,
            in_specs=in_specs,
            out_specs=out_spec,
        ),
        compiler_params=cparams,
        cost_estimate=cost,
    )(*operands)


# ------------------------------ reference ----------------------------------- #

def _reference(x, mask, scale):
    xf = x.astype(jnp.float32)
    if scale is not None:
        xf = xf * scale
    if mask is not None:
        xf = jnp.where(mask, _NEG_FILL, xf)
    return jax.nn.softmax(xf, axis=-1).astype(x.dtype)


if __name__ == "__main__":
    # Small shapes consistent with attention scores: [batch, heads, sq, sk]
    B, H, SQ, SK = 2, 4, 16, 128
    head_dim = 64
    scale = 1.0 / math.sqrt(head_dim)

    key = jax.random.PRNGKey(0)
    k1, k2, k3 = jax.random.split(key, 3)
    x = jax.random.normal(k1, (B, H, SQ, SK), dtype=jnp.float32).astype(jnp.bfloat16)

    # (a) full attention mask [b, 1, sq, sk], True = masked out.
    mask_full = jax.random.bernoulli(k2, p=0.3, shape=(B, 1, SQ, SK))
    mask_full = mask_full.at[..., 0].set(False)   # keep each row well-defined

    # (b) key-padding mask broadcast over sq: [b, 1, 1, sk].
    mask_pad = jax.random.bernoulli(k3, p=0.3, shape=(B, 1, 1, SK))
    mask_pad = mask_pad.at[..., 0].set(False)

    cases = [("full_mask", mask_full), ("padding_mask", mask_pad), ("no_mask", None)]
    for name, m in cases:
        out = jax.block_until_ready(fused_scale_mask_softmax(x, m, scale=scale))
        ref = _reference(x, m, scale)
        err = float(jnp.max(jnp.abs(out.astype(jnp.float32) - ref.astype(jnp.float32))))
        assert out.shape == x.shape and out.dtype == x.dtype, name
        assert err < 1e-2, f"{name}: max abs err {err}"

    print("KERNEL_OK")
</pallas_src>

<mosaic_0001>
module attributes {stable_mosaic.version = 11 : i64} {
  func.func @_masked_softmax_kernel(%arg0: i32, %arg1: i32, %arg2: i32, %arg3: memref<1x4x16x128xbf16, #tpu.memory_space<vmem>>, %arg4: memref<1x16x128xi8, #tpu.memory_space<vmem>>, %arg5: memref<1x4x16x128xbf16, #tpu.memory_space<vmem>>) attributes {dimension_semantics = [#tpu.dimension_semantics<parallel>, #tpu.dimension_semantics<parallel>, #tpu.dimension_semantics<parallel>], iteration_bounds = array<i64: 2, 1, 1>, scalar_prefetch = 0 : i64, scratch_operands = 0 : i64, tpu.core_type = #tpu.core_type<tc>, window_params = [{transform_indices = @transform_0, window_bounds = array<i64: 1, 4, 16, 128>}, {transform_indices = @transform_1, window_bounds = array<i64: 1, 16, 128>}, {transform_indices = @transform_2, window_bounds = array<i64: 1, 4, 16, 128>}]} {
    %c0 = arith.constant 0 : index
    %c0_0 = arith.constant 0 : index
    %c0_1 = arith.constant 0 : index
    %c0_2 = arith.constant 0 : index
    %0 = vector.load %arg3[%c0, %c0_0, %c0_1, %c0_2] : memref<1x4x16x128xbf16, #tpu.memory_space<vmem>>, vector<1x4x16x128xbf16>
    %1 = arith.extf %0 : vector<1x4x16x128xbf16> to vector<1x4x16x128xf32>
    %cst = arith.constant 1.250000e-01 : f32
    %2 = vector.broadcast %cst : f32 to vector<1x4x16x128xf32>
    %3 = arith.mulf %1, %2 : vector<1x4x16x128xf32>
    %c0_3 = arith.constant 0 : index
    %c0_4 = arith.constant 0 : index
    %c0_5 = arith.constant 0 : index
    %4 = vector.load %arg4[%c0_3, %c0_4, %c0_5] : memref<1x16x128xi8, #tpu.memory_space<vmem>>, vector<1x16x128xi8>
    %c0_i8 = arith.constant 0 : i8
    %5 = vector.broadcast %c0_i8 : i8 to vector<1x16x128xi8>
    %6 = arith.cmpi ne, %4, %5 : vector<1x16x128xi8>
    %7 = vector.shape_cast %6 : vector<1x16x128xi1> to vector<1x1x16x128xi1>
    %cst_6 = arith.constant -1.000000e+04 : f32
    %8 = vector.shape_cast %7 : vector<1x1x16x128xi1> to vector<1x1x16x128xi1>
    %9 = vector.broadcast %8 : vector<1x1x16x128xi1> to vector<1x4x16x128xi1>
    %10 = vector.broadcast %cst_6 : f32 to vector<1x4x16x128xf32>
    %11 = arith.select %9, %10, %3 : vector<1x4x16x128xi1>, vector<1x4x16x128xf32>
    %cst_7 = arith.constant dense<0xFF800000> : vector<1x4x16xf32>
    %12 = vector.multi_reduction <maximumf>, %11, %cst_7 [3] : vector<1x4x16x128xf32> to vector<1x4x16xf32>
    %13 = vector.shape_cast %12 : vector<1x4x16xf32> to vector<1x4x16x1xf32>
    %14 = vector.broadcast %13 : vector<1x4x16x1xf32> to vector<1x4x16x128xf32>
    %15 = arith.subf %11, %14 : vector<1x4x16x128xf32>
    %16 = math.exp %15 : vector<1x4x16x128xf32>
    %cst_8 = arith.constant dense<0.000000e+00> : vector<1x4x16xf32>
    %17 = vector.multi_reduction <add>, %16, %cst_8 [3] : vector<1x4x16x128xf32> to vector<1x4x16xf32>
    %18 = vector.shape_cast %17 : vector<1x4x16xf32> to vector<1x4x16x1xf32>
    %19 = tpu.reciprocal %18 {approx = true} : vector<1x4x16x1xf32> -> vector<1x4x16x1xf32>
    %20 = vector.broadcast %19 : vector<1x4x16x1xf32> to vector<1x4x16x128xf32>
    %21 = arith.mulf %16, %20 : vector<1x4x16x128xf32>
    %22 = arith.truncf %21 : vector<1x4x16x128xf32> to vector<1x4x16x128xbf16>
    %c0_9 = arith.constant 0 : index
    %c0_10 = arith.constant 0 : index
    %c0_11 = arith.constant 0 : index
    %c0_12 = arith.constant 0 : index
    %23 = vector.load %arg5[%c0_9, %c0_10, %c0_11, %c0_12] : memref<1x4x16x128xbf16, #tpu.memory_space<vmem>>, vector<1x4x16x128xbf16>
    tpu.vector_store %arg5[%c0_9, %c0_10, %c0_11, %c0_12], %22 {strides = array<i32>} : memref<1x4x16x128xbf16, #tpu.memory_space<vmem>>, vector<1x4x16x128xbf16>,
    return
  }
  func.func @transform_0(%arg0: i32, %arg1: i32, %arg2: i32) -> (i32, i32, i32, i32) {
    %c0_i32 = arith.constant 0 : i32
    %c0_i32_0 = arith.constant 0 : i32
    return %arg0, %arg2, %arg1, %c0_i32 : i32, i32, i32, i32
  }
  func.func @transform_1(%arg0: i32, %arg1: i32, %arg2: i32) -> (i32, i32, i32) {
    %c0_i32 = arith.constant 0 : i32
    %c0_i32_0 = arith.constant 0 : i32
    return %arg0, %arg1, %c0_i32 : i32, i32, i32
  }
  func.func @transform_2(%arg0: i32, %arg1: i32, %arg2: i32) -> (i32, i32, i32, i32) {
    %c0_i32 = arith.constant 0 : i32
    %c0_i32_0 = arith.constant 0 : i32
    return %arg0, %arg2, %arg1, %c0_i32 : i32, i32, i32, i32
  }
}

</mosaic_0001>

<bundles_post_ra>
// kernel: tpu_custom_call.1
= control target key start
LH: loop header
LB: loop body
LE: loop exit
PB: predicated region body
PF: predicated region fallthrough
CT: control target
= control target key end

     0   :  { %7 = vsyncpa [#allocation3], 0  ;;  %s1099_s0 = inlined_call_operand.hbm [shape: bf16[2,4,16,128], index: 0, kind: input, shape index: {}]   ;;  %s1100_s1 = inlined_call_operand.hbm [shape: s8[2,16,128], index: 1, kind: input, shape index: {}]   ;;  %s1101_s2 = inlined_call_operand.hbm [shape: bf16[2,4,16,128], index: 2, kind: output, shape index: {}]  }
   0x1   :  { %9 = vsyncpa [#allocation3 + $0x1], 0 }
   0x2   :  { %10 = vsyncpa [#allocation6], 0 }
   0x3   :  { %12 = vsyncpa [#allocation6 + $0x1], 0 }
   0x4   :  { %13 = vsyncpa [#allocation4], 0 }
   0x5   :  { %15 = vsyncpa [#allocation4 + $0x1], 0  ;;  %s895_s9 = smov 0   ;;  %s897_s10 = smov 0  }
   0x6   :  { %s899_s11 = smov 0   ;;  %s901_s12 = smov 0  }
   0x7   :  { %s903_s13 = smov 0   ;;  %s905_s14 = smov 0  }
   0x8 LB: > { %s542_s15 = sadd.s32 4294967295, %s868_s14   ;;  %s543_s16 = sadd.s32 4294967294, %s868_s14   ;;  %s868_s14 = sphi %s905_s14, %s21_s14   ;;  %s864_s13 = sphi %s903_s13, %s1116_s13   ;;  %s860_s12 = sphi %s901_s12, %s1115_s12   ;;  %s856_s11 = sphi %s899_s11, %s1114_s11   ;;  %s852_s10 = sphi %s897_s10, %s1113_s10   ;;  %s848_s9 = sphi %s895_s9, %s1112_s9  }
   0x9   : > { %s40_s17 = sadd.s32 1, %s864_s13  ;;  %s51_s18 = sadd.s32 1, %s856_s11 }
   0xa   : > { %p42_p0 = scmp.ge.s32.totalorder %s40_s17, 2  ;;  %p58_p1 = scmp.ne.s32.totalorder %s856_s11, %s852_s10 }
   0xb   : > { %p59_p2 = scmp.eq.s32.totalorder %s868_s14, 0  ;;  %p64_p3 = scmp.ne.s32.totalorder %s852_s10, %s848_s9 }
   0xc   : > { %s1118_s17 = smov (%p42_p0, %s40_s17), 0  ;;  %p65_p5 = scmp.eq.s32.totalorder %s542_s15, 0 }
   0xd   : > { %p936_p4 = por %p59_p2, %p58_p1  ;;  %s44_s20 = ssub.s32 %s864_s13, %s1118_s17 }
   0xe   : > { %p120_p6 = scmp.eq.s32.totalorder %s542_s15, 1  ;;  %p49_p7 = scmp.eq.s32.totalorder %s44_s20, 0 }
   0xf   : > { %p942_p8 = por %p65_p5, %p64_p3  ;;  %p126_p10 = scmp.eq.s32.totalorder %s543_s16, 1 }
  0x10   : > { %p946_p9 = por %p120_p6, %p58_p1  ;;  %p545_p12 = scmp.ge.s32.totalorder %s868_s14, 2 }
  0x11   : > { %s951_s23 = scalar_select %p49_p7, %s856_s11, %s51_s18  }
  0x12   : > { %p953_p11 = por %p126_p10, %p64_p3  ;;  %p639_p13 = scmp.lt.s32.totalorder %s868_s14, 2 }
  0x13   : > { %s960_s25 = sand.u32 1, %s856_s11   ;;  %s569_s27 = sshll.u32 %s864_s13, 9 }
  0x14   : > { %s546_s26 = sshll.u32 %s960_s25, 5  ;;  %s161_s30 = scalar_lea.hbm %s1099_s0, %s569_s27 }
  0x15   : > { %s150_s3 = scalar_lea.vmem [#allocation2], %s546_s26  ;;  %p969_p0 = pnand %p639_p13, %p936_p4 }
  0x16   : > { %s162_s4 = sshll.u32 %s150_s3, 4  ;;  %p552_p1 = scmp.ge.s32.totalorder %s868_s14, 1  ;;  %s163_s4 = int_to_ptr.vmem [resolvable:$true] %s162_s4 }
  0x17   : > { %s147_s6 = scalar_lea.sflag [#allocation3], %s960_s25  ;;  %p730_p2 = pneg %p969_p0 }
  0x18   : > { %s741_s7 = scalar_lea.vmem %s163_s4, 512  ;;  %s870_s8 = smov [#allocation2]  }
  0x19   : > { %p742_p3 = scmp.ne.s32.totalorder %s163_s4, %s741_s7  ;;  %s746_s15 = sshll.u32 %s870_s8, 4  ;;  %s747_s15 = int_to_ptr.vmem [resolvable:$false] %s746_s15 }
  0x1a   : > { %s748_s16 = scalar_lea.vmem %s747_s15, 1024  ;;  %p749_p4 = scmp.lt.s32.totalorder %s163_s4, %s747_s15 }
  0x1b   : > { %p744_p5 = pnand %p742_p3, %p730_p2  ;;  %p750_p7 = scmp.lt.s32.totalorder %s748_s16, %s741_s7 }
  0x1d   : > { %p745_p6 = pneg %p744_p5  ;;  %p751_p10 = por %p750_p7, %p749_p4 }
  0x1f   : > { %p752_p13 = pnand %p751_p10, %p745_p6 }
  0x21   : > { %755 = shalt.err (!%p752_p13)
}
  0x22   : > { %s871_s18 = smov 64   ;;  %s872_s19 = smov 4  }
  0x23   : > { %631 = dma.hbm_to_vmem [thread:$0]  (!%p969_p0), %s161_s30, 512, %s163_s4, %s147_s6, %s871_s18, %s871_s18, %s872_s19  }
  0x24   : > { %p193_p3 = scmp.lt.s32.totalorder %s868_s14, 3  ;;  %s549_s20 = sshll.u32 %s960_s25, 2 }
  0x25   : > { %s570_s26 = sshll.u32 %s864_s13, 6  ;;  %s176_s7 = scalar_lea.vmem [#allocation5], %s549_s20 }
  0x26   : > { %p987_p5 = pnand %p552_p1, %p193_p3  ;;  %s184_s3 = scalar_lea.hbm %s1100_s1, %s570_s26 }
  0x27   : > { %s185_s8 = sshll.u32 %s176_s7, 4  ;;  %s173_s15 = scalar_lea.sflag [#allocation6], %s960_s25  ;;  %s186_s8 = int_to_ptr.vmem [resolvable:$true] %s185_s8 }
  0x28   : > { %s769_s16 = scalar_lea.vmem %s186_s8, 64  ;;  %s873_s30 = smov [#allocation5]  }
  0x29   : > { %p770_p6 = scmp.ne.s32.totalorder %s186_s8, %s769_s16  ;;  %s774_s4 = sshll.u32 %s873_s30, 4  ;;  %s775_s4 = int_to_ptr.vmem [resolvable:$false] %s774_s4 }
  0x2a   : > { %s776_s6 = scalar_lea.vmem %s775_s4, 128  ;;  %p777_p1 = scmp.lt.s32.totalorder %s186_s8, %s775_s4 }
  0x2b   : > { %p772_p4 = pnand %p770_p6, %p730_p2  ;;  %p778_p10 = scmp.lt.s32.totalorder %s776_s6, %s769_s16 }
  0x2d   : > { %p773_p7 = pneg %p772_p4  ;;  %p779_p13 = por %p778_p10, %p777_p1 }
  0x2f   : > { %p780_p3 = pnand %p779_p13, %p773_p7 }
  0x31   : > { %783 = shalt.err (!%p780_p3)
}
  0x32   : > { %s874_s18 = smov 32   ;;  %s875_s19 = smov 2  }
  0x33   : > { %634 = dma.hbm_to_vmem [thread:$0]  (!%p969_p0), %s184_s3, 64, %s186_s8, %s173_s15, %s874_s18, %s874_s18, %s875_s19  }
  0x34   : > { %197 = sbr.rel (%p987_p5) target bundleno = 411 (0x19b), region = 28  ;;  %s1003_s25 = sand.u32 (!%p987_p5), 1, %s852_s10  }
  0x35   : > { %s553_s20 = sshll.u32 (!%p987_p5), %s1003_s25, 5  ;;  %s200_s26 = scalar_lea.sflag (!%p987_p5), [#allocation3], %s1003_s25 }
  0x36   : > { %s203_s28 = scalar_lea.vmem (!%p987_p5), [#allocation2], %s553_s20 }
  0x39   : > { %835 = dma.done.wait (%p942_p8), %s200_s26, 512  }
  0x3a   : > { %837 = vsyncadd (%p942_p8), %s200_s26, 4294966784  ;;  %s554_s5 = sshll.u32 %s1003_s25, 2  ;;  %s209_s27 = scalar_lea.sflag [#allocation6], %s1003_s25 }
  0x3b   : > { %s212_s29 = scalar_lea.vmem [#allocation5], %s554_s5 }
  0x3c   : > { %839 = dma.done.wait (%p942_p8), %s209_s27, 64  }
  0x3d   : > { %841 = vsyncadd (%p942_p8), %s209_s27, 4294967232  ;;  %v581_v0 = vld [vmem:[%s203_s28] sm:$0xff]   ;;  %v616_v2 = vld [vmem:[%s203_s28 + $0x8] sm:$0xff]   ;;  %v876_v8 = vmov 0   ;;  %s237_s21 = scalar_lea.vmem [#allocation7], %s553_s20  ;;  %s579_s3 = sshll.u32 %s860_s12, 9 }
  0x3e   : > { %v269_v1 = vld [vmem:[%s212_s29] sm:$0x3]  ;;  %v582_v3 = vunpack.c.l.bf16 %v581_v0  ;;  %v586_v4 = vunpack.c.l.bf16 %v616_v2  ;;  %v583_v5 = vunpack.c.h.bf16 %v581_v0  ;;  %v270_v6 = vld [vmem:[%s212_s29 + $0x2] sm:$0x3]  ;;  %v617_v7 = vld [vmem:[%s203_s28 + $0x10] sm:$0xff]   ;;  %v587_v10 = vunpack.c.h.bf16 %v616_v2  ;;  %s422_s7 = sshll.u32 %s237_s21, 4  ;;  %s1049_s16 = scalar_lea.hbm %s1101_s2, %s579_s3  ;;  %s1051_s7 = int_to_ptr.vmem [resolvable:$true] %s422_s7 }
  0x3f   : > { %vm271_vm0 = vnez %v269_v1  ;;  %vm272_vm1 = vnez %v270_v6  ;;  %v590_v14 = vunpack.c.l.bf16 %v617_v7  ;;  %v591_v18 = vunpack.c.h.bf16 %v617_v7  ;;  %v618_v19 = vld [vmem:[%s203_s28 + $0x18] sm:$0xff]   ;;  %s404_s30 = scalar_lea.sflag [#allocation4], %s1003_s25  ;;  %s784_s4 = scalar_lea.vmem %s1051_s7, 512 }
  0x40   : > { %v273_v9 = vsel %vm271_vm0, 16843009, %v876_v8  ;;  %v261_v11 = vmul.f32 0.125, %v582_v3  ;;  %v263_v13 = vmul.f32 0.125, %v586_v4  ;;  %v262_v15 = vmul.f32 0.125, %v583_v5  ;;  %p785_p8 = scmp.ne.s32.totalorder %s1051_s7, %s784_s4  ;;  %s877_s12 = smov [#allocation7]  }
  0x41   : > { %v275_v12 = vunpack.c.0.s8 %v273_v9  ;;  %v274_v16 = vsel %vm272_vm1, 16843009, %v876_v8  ;;  %v264_v17 = vmul.f32 0.125, %v587_v10  ;;  %v265_v25 = vmul.f32 0.125, %v590_v14  ;;  %s788_s6 = sshll.u32 %s877_s12, 4  ;;  %s789_s6 = int_to_ptr.vmem [resolvable:$false] %s788_s6 }
  0x42   : > { %v276_v21 = vunpack.c.0.s8 %v274_v16  ;;  %v594_v26 = vunpack.c.l.bf16 %v618_v19  ;;  %v266_v29 = vmul.f32 0.125, %v591_v18  ;;  %v595_v30 = vunpack.c.h.bf16 %v618_v19  ;;  %p786_p0 = pnand %p785_p8, %p946_p9  ;;  %s790_s18 = scalar_lea.vmem %s789_s6, 1024 }
  0x43   : > { %vm1019_vm2 = vcmp.ne.s32.totalorder %v275_v12, 0  ;;  %p791_p5 = scmp.lt.s32.totalorder %s1051_s7, %s789_s6  ;;  %p792_p6 = scmp.lt.s32.totalorder %s790_s18, %s784_s4 }
  0x44   : > { %v283_v22 = vsel %vm1019_vm2, -10000.0, %v261_v11  ;;  %v285_v23 = vsel %vm1019_vm2, -10000.0, %v263_v13  ;;  %vm1027_vm3 = vcmp.ne.s32.totalorder %v276_v21, 0  ;;  %v287_v31 = vsel %vm1019_vm2, -10000.0, %v265_v25  ;;  %p787_p2 = pneg %p786_p0 }
  0x45   : > { %291 = vmax.xlane.f32.xlu0 %v283_v22  ;;  %295 = vmax.xlane.f32.xlu1 %v285_v23  ;;  %v284_v27 = vsel %vm1027_vm3, -10000.0, %v262_v15  ;;  %v286_v28 = vsel %vm1027_vm3, -10000.0, %v264_v17  ;;  %v288_v32 = vsel %vm1027_vm3, -10000.0, %v266_v29  ;;  %v267_v33 = vmul.f32 0.125, %v594_v26  ;;  %p793_p4 = por %p792_p6, %p791_p5 }
  0x46   : > { %v268_v34 = vmul.f32 0.125, %v595_v30 }
  0x47   : > { %v289_v35 = vsel %vm1019_vm2, -10000.0, %v267_v33  ;;  %p794_p7 = pnand %p793_p4, %p787_p2 }
  0x48   : > { %v290_v36 = vsel %vm1027_vm3, -10000.0, %v268_v34 }
  0x49   : > { %293 = vmax.xlane.f32.xlu0 %v284_v27  ;;  %297 = vmax.xlane.f32.xlu1 %v286_v28 }
  0x4d   : > { %299 = vmax.xlane.f32.xlu0 %v287_v31  ;;  %301 = vmax.xlane.f32.xlu1 %v288_v32 }
  0x51   : > { %303 = vmax.xlane.f32.xlu0 %v289_v35  ;;  %305 = vmax.xlane.f32.xlu1 %v290_v36 }
  0xce   : > { %v292_v37 = vpop.xlane.xlu0 %291  ;;  %v296_v38 = vpop.xlane.xlu1 %295 }
  0xcf   : > { %v307_v39 = vsub.f32 %v283_v22, %v292_v37  ;;  %v309_v40 = vsub.f32 %v285_v23, %v296_v38 }
  0xd1   : > { %v315_v41 = vmul.f32 1.442695, %v307_v39  ;;  %v319_v42 = vmul.f32 1.442695, %v309_v40 }
  0xd2   : > { %v294_v43 = vpop.xlane.xlu0 %293  ;;  %v298_v44 = vpop.xlane.xlu1 %297 }
  0xd3   : > { %696 = vpow2.f32 %v315_v41  ;;  %v308_v45 = vsub.f32 %v284_v27, %v294_v43  ;;  %v310_v46 = vsub.f32 %v286_v28, %v298_v44 }
  0xd4   : > { %698 = vpow2.f32 %v319_v42 }
  0xd5   : > { %v317_v47 = vmul.f32 1.442695, %v308_v45  ;;  %v321_v48 = vmul.f32 1.442695, %v310_v46 }
  0xd6   : > { %v300_v49 = vpop.xlane.xlu0 %299  ;;  %v302_v50 = vpop.xlane.xlu1 %301 }
  0xd7   : > { %700 = vpow2.f32 %v317_v47  ;;  %v311_v51 = vsub.f32 %v287_v31, %v300_v49  ;;  %v312_v52 = vsub.f32 %v288_v32, %v302_v50 }
  0xd8   : > { %702 = vpow2.f32 %v321_v48 }
  0xd9   : > { %v323_v53 = vmul.f32 1.442695, %v311_v51  ;;  %v325_v54 = vmul.f32 1.442695, %v312_v52 }
  0xda   : > { %v304_v55 = vpop.xlane.xlu0 %303  ;;  %v306_v56 = vpop.xlane.xlu1 %305 }
  0xdb   : > { %704 = vpow2.f32 %v323_v53  ;;  %v313_v57 = vsub.f32 %v289_v35, %v304_v55  ;;  %v314_v58 = vsub.f32 %v290_v36, %v306_v56 }
  0xdc   : > { %706 = vpow2.f32 %v325_v54 }
  0xdd   : > { %v327_v59 = vmul.f32 1.442695, %v313_v57  ;;  %v329_v60 = vmul.f32 1.442695, %v314_v58 }
  0xdf   : > { %708 = vpow2.f32 %v327_v59 }
  0xe0   : > { %v697_v61 = vpop.eup %696  ;;  %710 = vpow2.f32 %v329_v60 }
  0xe1   : > { %331 = vadd.xlane.f32.xlu0 %v697_v61  ;;  %v699_v62 = vpop.eup %698 }
  0xe4   : > { %v701_v63 = vpop.eup %700 }
  0xe5   : > { %335 = vadd.xlane.f32.xlu0 %v699_v62  ;;  %333 = vadd.xlane.f32.xlu1 %v701_v63  ;;  %v703_v0 = vpop.eup %702 }
  0xe8   : > { %v705_v1 = vpop.eup %704 }
  0xe9   : > { %337 = vadd.xlane.f32.xlu1 %v703_v0  ;;  %339 = vadd.xlane.f32.xlu0 %v705_v1  ;;  %v707_v2 = vpop.eup %706 }
  0xec   : > { %v709_v3 = vpop.eup %708 }
  0xed   : > { %341 = vadd.xlane.f32.xlu1 %v707_v2  ;;  %343 = vadd.xlane.f32.xlu0 %v709_v3  ;;  %v711_v4 = vpop.eup %710 }
  0xf1   : > { %345 = vadd.xlane.f32.xlu1 %v711_v4 }
 0x16a   : > { %v332_v5 = vpop.xlane.xlu0 %331 }
 0x16b   : > { %712 = vrcp.f32 %v332_v5 }
 0x16e   : > { %v334_v6 = vpop.xlane.xlu1 %333  ;;  %v336_v7 = vpop.xlane.xlu0 %335 }
 0x16f   : > { %714 = vrcp.f32 %v334_v6 }
 0x170   : > { %716 = vrcp.f32 %v336_v7 }
 0x172   : > { %v338_v8 = vpop.xlane.xlu1 %337  ;;  %v340_v9 = vpop.xlane.xlu0 %339 }
 0x173   : > { %718 = vrcp.f32 %v338_v8 }
 0x174   : > { %720 = vrcp.f32 %v340_v9 }
 0x176   : > { %v342_v10 = vpop.xlane.xlu1 %341  ;;  %v344_v11 = vpop.xlane.xlu0 %343 }
 0x177   : > { %722 = vrcp.f32 %v342_v10 }
 0x178   : > { %724 = vrcp.f32 %v344_v11  ;;  %v713_v12 = vpop.eup %712 }
 0x179   : > { %v355_v15 = vmul.f32 %v713_v12, %v697_v61 }
 0x17a   : > { %v346_v13 = vpop.xlane.xlu1 %345 }
 0x17b   : > { %726 = vrcp.f32 %v346_v13 }
 0x17c   : > { %v715_v14 = vpop.eup %714 }
 0x17d   : > { %v356_v16 = vmul.f32 %v715_v14, %v701_v63  ;;  %v717_v17 = vpop.eup %716 }
 0x17e   : > { %v357_v20 = vmul.f32 %v717_v17, %v699_v62 }
 0x17f   : > { %v599_v18 = vpack.c.bf16 %v356_v16, %v355_v15 }
 0x180   : > { %v719_v19 = vpop.eup %718 }
 0x181   : > { %600 = vst [vmem:[%s237_s21] sm:$0xff] %v599_v18   ;;  %v358_v21 = vmul.f32 %v719_v19, %v703_v0  ;;  %v721_v22 = vpop.eup %720 }
 0x182   : > { %v359_v25 = vmul.f32 %v721_v22, %v705_v1 }
 0x183   : > { %v604_v23 = vpack.c.bf16 %v358_v21, %v357_v20 }
 0x184   : > { %v723_v24 = vpop.eup %722 }
 0x185   : > { %619 = vst [vmem:[%s237_s21 + $0x8] sm:$0xff] %v604_v23   ;;  %v360_v26 = vmul.f32 %v723_v24, %v707_v2  ;;  %v725_v27 = vpop.eup %724 }
 0x186   : > { %v361_v30 = vmul.f32 %v725_v27, %v709_v3 }
 0x187   : > { %v609_v28 = vpack.c.bf16 %v360_v26, %v359_v25 }
 0x188   : > { %v727_v29 = vpop.eup %726 }
 0x189   : > { %620 = vst [vmem:[%s237_s21 + $0x10] sm:$0xff] %v609_v28   ;;  %v362_v31 = vmul.f32 %v727_v29, %v711_v4 }
 0x18b   : > { %v614_v32 = vpack.c.bf16 %v362_v31, %v361_v30 }
 0x18d   : > { %621 = vst [vmem:[%s237_s21 + $0x18] sm:$0xff] %v614_v32  }
 0x18e   : > { %797 = shalt.err (!%p794_p7)
}
 0x18f   : > { %s798_s19 = scalar_lea.hbm %s1049_s16, 512  ;;  %s802_s28 = scalar_lea.hbm %s1101_s2, 1024 }
 0x190   : > { %p799_p1 = scmp.ne.s32.totalorder %s1049_s16, %s798_s19  ;;  %p803_p3 = scmp.lt.s32.totalorder %s1049_s16, %s1101_s2 }
 0x191   : > { %p804_p8 = scmp.lt.s32.totalorder %s802_s28, %s798_s19 }
 0x192   : > { %p800_p10 = pnand %p799_p1, %p946_p9 }
 0x193   : > { %p805_p0 = por %p804_p8, %p803_p3 }
 0x194   : > { %p801_p13 = pneg %p800_p10 }
 0x196   : > { %p806_p2 = pnand %p805_p0, %p801_p13 }
 0x198   : > { %809 = shalt.err (!%p806_p2)
}
 0x199   : > { %s878_s29 = smov 64   ;;  %s879_s21 = smov 4  }
 0x19a   : > { %626 = dma.vmem_to_hbm [thread:$0]  (%p946_p9), %s1051_s7, 512, %s1049_s16, %s404_s30, %s878_s29, %s878_s29, %s879_s21  }
 0x19b PF: > { %s437_s3 = sand.u32 1, %s848_s9   ;;  %p636_p5 = pnand %p545_p12, %p953_p11 }
 0x19c   : > { %s438_s8 = scalar_lea.sflag [#allocation4], %s437_s3 }
 0x19d   : > { %p637_p6 = pneg %p636_p5 }
 0x19f   : > { %843 = dma.done.wait (%p637_p6), %s438_s8, 512  }
 0x1a0   : > { %845 = vsyncadd (%p637_p6), %s438_s8, 4294966784  ;;  %s21_s14 = sadd.s32 1, %s868_s14   ;;  %s1112_s9 = smov %s852_s10 }
 0x1a1   : > { %p18_p4 = scmp.ge.s32.totalorder %s21_s14, 4   ;;  %s1113_s10 = smov %s856_s11 }
 0x1a2   : > { %s1114_s11 = smov %s951_s23  ;;  %s1115_s12 = smov %s864_s13 }
 0x1a3   : > { %s1116_s13 = smov %s1118_s17  ;;  %20 = sbr.rel (!%p18_p4) target bundleno = 8 (0x8), region = 86 }
 0x1a8   :  { %443 = vsyncpa [#allocation3], 1 }
 0x1a9   :  { %445 = vsyncpa [#allocation3 + $0x1], 1 }
 0x1aa   :  { %446 = vsyncpa [#allocation6], 1 }
 0x1ab   :  { %448 = vsyncpa [#allocation6 + $0x1], 1 }
 0x1ac   :  { %449 = vsyncpa [#allocation4], 1 }
 0x1ad   :  { %451 = vsyncpa [#allocation4 + $0x1], 1 }

</bundles_post_ra>
